<compile_context>
chip_gen: v7x
topology: tpu7x:2x2x1
jax: 0.10.0
libtpu: 0.0.40
codegen_flags: <defaults>
</compile_context>

<pallas_src>
import jax
import jax.numpy as jnp
from jax.experimental import pallas as pl
from jax.experimental.pallas import tpu as pltpu


# ---------------------------------------------------------------------------
# Kernels
# ---------------------------------------------------------------------------

def _accumulate_and_emit(x_ref, w, bias_fn, o_ref, acc_ref):
    """Shared K-reduction: init acc @ k==0, emit (acc + bias) @ k==last."""
    k = pl.program_id(1)

    @pl.when(k == 0)
    def _():
        acc_ref[...] = jnp.zeros_like(acc_ref)

    acc_ref[...] += jnp.dot(x_ref[...], w, preferred_element_type=jnp.float32)

    @pl.when(k == pl.num_programs(1) - 1)
    def _():
        o_ref[...] = (acc_ref[...] + bias_fn()).astype(o_ref.dtype)


def _eval_kernel(x_ref, weff_ref, bmu_ref, o_ref, acc_ref):
    # weight already folded offline: w_eff = alpha * weight_mu, stored (I, O)
    _accumulate_and_emit(x_ref, weff_ref[...], lambda: bmu_ref[...], o_ref, acc_ref)


def _sample_kernel(x_ref, cg_ref, wmu_ref, wsig_ref, epsw_ref,
                   bmu_ref, bsig_ref, epsb_ref, o_ref, acc_ref):
    # sigma is pre-folded host-side -> pure mul/add on the VPU, matmul on MXU.
    w = cg_ref[...] * (wmu_ref[...] + wsig_ref[...] * epsw_ref[...])

    def bias():
        # Lazily evaluated only under the last-K predicate.
        return bmu_ref[...] + bsig_ref[...] * epsb_ref[...]

    _accumulate_and_emit(x_ref, w, bias, o_ref, acc_ref)


# ---------------------------------------------------------------------------
# BlockSpecs / wrapper
# ---------------------------------------------------------------------------

def _x_spec(B, tk):
    return pl.BlockSpec((B, tk), lambda o, k: (0, k))


def _w_spec(tk, to):
    return pl.BlockSpec((tk, to), lambda o, k: (k, o))


def _row_spec(to):
    return pl.BlockSpec((1, to), lambda o, k: (0, o))


def _out_spec(B, to):
    return pl.BlockSpec((B, to), lambda o, k: (0, o))


_COMPILER_PARAMS = pltpu.CompilerParams(
    dimension_semantics=("parallel", "arbitrary"),
    vmem_limit_bytes=48 * 1024 * 1024,
)


class BayesianLinear:
    """JAX/Pallas port of the torch BayesianLinear forward pass.

    Weight-shaped tensors (weight_mu, weight_rho/sigma, alpha, lambdal, cgamma)
    are stored / expected transposed as (in_features, out_features) so the MXU
    contraction is x @ W with out_features lane-major (no in-kernel transpose).
    """

    def __init__(self, in_features, out_features, key, tile_out=256, tile_in=512):
        self.in_features = in_features
        self.out_features = out_features
        self.tile_out = tile_out
        self.tile_in = tile_in
        I, O = in_features, out_features
        ks = jax.random.split(key, 8)
        # Parameter init ranges follow the torch __init__ (synthetic values).
        self.weight_mu_t = jax.random.uniform(ks[0], (I, O), jnp.float32, -0.01, 0.01)
        self.weight_rho_t = -9.0 + 0.1 * jax.random.normal(ks[1], (I, O), jnp.float32)
        self.lambdal_t = jax.random.uniform(ks[2], (I, O), jnp.float32, -10.0, 10.0)
        self.alpha_t = jax.random.uniform(ks[3], (I, O), jnp.float32, 0.999, 0.9999)
        self.bias_mu_row = jax.random.uniform(ks[4], (1, O), jnp.float32, -0.2, 0.2)
        self.bias_rho_row = -9.0 + 1.0 * jax.random.normal(ks[5], (1, O), jnp.float32)
        self.bias_a = jax.random.uniform(ks[6], (O,), jnp.float32, 1.0, 1.1)
        self.bias_b = jax.random.uniform(ks[7], (O,), jnp.float32, 1.0, 1.1)
        self.refresh_derived()

    def refresh_derived(self):
        """Fold derived parameters once (call after any parameter update)."""
        # Eval-path effective weight: alpha * weight_mu.
        self.w_eff_t = self.alpha_t * self.weight_mu_t
        # Pre-folded sigmas (exact torch formula): sigma = log1p(exp(rho)+1e-8).
        self.weight_sigma_t = jnp.log1p(jnp.exp(self.weight_rho_t) + 1e-8)
        self.bias_sigma_row = jnp.log1p(jnp.exp(self.bias_rho_row) + 1e-8)

    def _tiles(self):
        O, I = self.out_features, self.in_features
        to = O if O <= self.tile_out else self.tile_out
        tk = I if I <= self.tile_in else self.tile_in
        assert O % to == 0 and I % tk == 0, "features must divide the tile sizes"
        assert (to % 128 == 0) or (to == O), "out tile must be lane-dense (mult of 128)"
        assert (tk % 128 == 0) or (tk == I), "in tile must be lane-dense (mult of 128)"
        return to, tk

    def forward(self, x, cgamma_t, sample=False, key=None, eps_w_t=None, eps_b=None):
        B = x.shape[0]
        I, O = self.in_features, self.out_features
        to, tk = self._tiles()
        grid = (O // to, I // tk)
        scratch = [pltpu.VMEM((B, to), jnp.float32)]
        out_shape = jax.ShapeDtypeStruct((B, O), jnp.float32)

        if sample:
            if eps_w_t is None:
                # Host-side standard-normal draws (== torch Normal(0,1).sample).
                kw, kb = jax.random.split(key)
                eps_w_t = jax.random.normal(kw, (I, O), jnp.float32)
                eps_b = jax.random.normal(kb, (1, O), jnp.float32)
            grid_spec = pltpu.PrefetchScalarGridSpec(
                num_scalar_prefetch=0,
                grid=grid,
                in_specs=[_x_spec(B, tk),
                          _w_spec(tk, to), _w_spec(tk, to), _w_spec(tk, to),
                          _w_spec(tk, to),
                          _row_spec(to), _row_spec(to), _row_spec(to)],
                out_specs=_out_spec(B, to),
                scratch_shapes=scratch,
            )
            return pl.pallas_call(
                _sample_kernel,
                out_shape=out_shape,
                grid_spec=grid_spec,
                compiler_params=_COMPILER_PARAMS,
            )(x, cgamma_t, self.weight_mu_t, self.weight_sigma_t, eps_w_t,
              self.bias_mu_row, self.bias_sigma_row, eps_b)

        # Eval path: weight = alpha * weight_mu (pre-folded), bias = bias_mu.
        grid_spec = pltpu.PrefetchScalarGridSpec(
            num_scalar_prefetch=0,
            grid=grid,
            in_specs=[_x_spec(B, tk), _w_spec(tk, to), _row_spec(to)],
            out_specs=_out_spec(B, to),
            scratch_shapes=scratch,
        )
        return pl.pallas_call(
            _eval_kernel,
            out_shape=out_shape,
            grid_spec=grid_spec,
            compiler_params=_COMPILER_PARAMS,
        )(x, self.w_eff_t, self.bias_mu_row)


# ---------------------------------------------------------------------------
# Self-test
# ---------------------------------------------------------------------------

if __name__ == "__main__":
    key = jax.random.PRNGKey(0)
    k_param, k_x, k_gamma, k_eps, k_fwd = jax.random.split(key, 5)

    batch, in_features, out_features = 8, 256, 256
    # tile 128x128 at these shapes -> 2x2 grid (exercises parallel + reduction axes)
    layer = BayesianLinear(in_features, out_features, k_param,
                           tile_out=128, tile_in=128)

    x = jax.random.normal(k_x, (batch, in_features), jnp.float32)
    # Relaxed-Bernoulli indicator drawn by the caller, already transposed (I, O).
    cgamma_t = jax.random.bernoulli(k_gamma, layer.alpha_t).astype(jnp.float32)

    # ---- eval path (training == False, sample == False) --------------------
    y_eval = layer.forward(x, cgamma_t, sample=False)
    jax.block_until_ready(y_eval)
    ref_eval = x @ (layer.alpha_t * layer.weight_mu_t) + layer.bias_mu_row
    assert jnp.allclose(y_eval, ref_eval, atol=1e-4, rtol=1e-3), "eval path mismatch"

    # ---- sample path with explicit eps (exact check of the sampling math) --
    kw, kb = jax.random.split(k_eps)
    eps_w_t = jax.random.normal(kw, (in_features, out_features), jnp.float32)
    eps_b = jax.random.normal(kb, (1, out_features), jnp.float32)
    y_s_eps = layer.forward(x, cgamma_t, sample=True, eps_w_t=eps_w_t, eps_b=eps_b)
    jax.block_until_ready(y_s_eps)
    sig_w = jnp.log1p(jnp.exp(layer.weight_rho_t) + 1e-8)     # torch-style sigma
    sig_b = jnp.log1p(jnp.exp(layer.bias_rho_row) + 1e-8)
    w_ref = cgamma_t * (layer.weight_mu_t + sig_w * eps_w_t)
    b_ref = layer.bias_mu_row + sig_b * eps_b
    ref_samp = x @ w_ref + b_ref
    assert jnp.allclose(y_s_eps, ref_samp, atol=1e-4, rtol=1e-3), "sample(eps) mismatch"

    # ---- sample path with an RNG key (production Monte-Carlo forward) ------
    y_s = layer.forward(x, cgamma_t, sample=True, key=k_fwd)
    jax.block_until_ready(y_s)
    assert bool(jnp.all(jnp.isfinite(y_s))), "sample(key) non-finite output"
    # rho ~ -9 => sigma ~ 1e-4: output must hug the mean prediction but carry noise.
    mean_pred = x @ (cgamma_t * layer.weight_mu_t) + layer.bias_mu_row
    max_dev = float(jnp.max(jnp.abs(y_s - mean_pred)))
    assert max_dev < 0.05, f"sample(key) deviates too much from mean ({max_dev})"
    assert max_dev > 1e-7, "sample(key) produced no noise"

    print("KERNEL_OK")
</pallas_src>

<mosaic_0001>
module attributes {stable_mosaic.version = 11 : i64} {
  func.func @_eval_kernel(%arg0: i32, %arg1: i32, %arg2: memref<8x128xf32, #tpu.memory_space<vmem>>, %arg3: memref<128x128xf32, #tpu.memory_space<vmem>>, %arg4: memref<1x128xf32, #tpu.memory_space<vmem>>, %arg5: memref<8x128xf32, #tpu.memory_space<vmem>>, %arg6: memref<8x128xf32, #tpu.memory_space<vmem>>) attributes {dimension_semantics = [#tpu.dimension_semantics<parallel>, #tpu.dimension_semantics<arbitrary>], iteration_bounds = array<i64: 2, 2>, scalar_prefetch = 0 : i64, scratch_operands = 1 : i64, tpu.core_type = #tpu.core_type<tc>, window_params = [{transform_indices = @transform_0, window_bounds = array<i64: 8, 128>}, {transform_indices = @transform_1, window_bounds = array<i64: 128, 128>}, {transform_indices = @transform_2, window_bounds = array<i64: 1, 128>}, {transform_indices = @transform_3, window_bounds = array<i64: 8, 128>}]} {
    %c0 = arith.constant 0 : index
    %c0_0 = arith.constant 0 : index
    %0 = vector.load %arg3[%c0, %c0_0] : memref<128x128xf32, #tpu.memory_space<vmem>>, vector<128x128xf32>
    %c0_i32 = arith.constant 0 : i32
    %1 = arith.cmpi eq, %arg1, %c0_i32 : i32
    %2 = arith.extui %1 : i1 to i32
    %c0_i32_1 = arith.constant 0 : i32
    %3 = arith.cmpi ne, %2, %c0_i32_1 : i32
    scf.if %3 {
      %cst_9 = arith.constant 0.000000e+00 : f32
      %12 = vector.broadcast %cst_9 : f32 to vector<8x128xf32>
      %c0_10 = arith.constant 0 : index
      %c0_11 = arith.constant 0 : index
      %13 = vector.load %arg6[%c0_10, %c0_11] : memref<8x128xf32, #tpu.memory_space<vmem>>, vector<8x128xf32>
      tpu.vector_store %arg6[%c0_10, %c0_11], %12 {strides = array<i32>} : memref<8x128xf32, #tpu.memory_space<vmem>>, vector<8x128xf32>,
    } else {
    }
    %c0_2 = arith.constant 0 : index
    %c0_3 = arith.constant 0 : index
    %4 = vector.load %arg6[%c0_2, %c0_3] : memref<8x128xf32, #tpu.memory_space<vmem>>, vector<8x128xf32>
    %c0_4 = arith.constant 0 : index
    %c0_5 = arith.constant 0 : index
    %5 = vector.load %arg2[%c0_4, %c0_5] : memref<8x128xf32, #tpu.memory_space<vmem>>, vector<8x128xf32>
    %cst = arith.constant dense<0.000000e+00> : vector<8x128xf32>
    %6 = tpu.matmul %5, %0, %cst {dimension_numbers = #tpu.dot_dimension_numbers<[1], [0], [0], [1], [0, 0, 1, 1], [], []>} : vector<8x128xf32>, vector<128x128xf32>, vector<8x128xf32> -> vector<8x128xf32>
    %7 = arith.addf %4, %6 : vector<8x128xf32>
    %c0_6 = arith.constant 0 : index
    %c0_7 = arith.constant 0 : index
    %8 = vector.load %arg6[%c0_6, %c0_7] : memref<8x128xf32, #tpu.memory_space<vmem>>, vector<8x128xf32>
    tpu.vector_store %arg6[%c0_6, %c0_7], %7 {strides = array<i32>} : memref<8x128xf32, #tpu.memory_space<vmem>>, vector<8x128xf32>,
    %c1_i32 = arith.constant 1 : i32
    %9 = arith.cmpi eq, %arg1, %c1_i32 : i32
    %10 = arith.extui %9 : i1 to i32
    %c0_i32_8 = arith.constant 0 : i32
    %11 = arith.cmpi ne, %10, %c0_i32_8 : i32
    scf.if %11 {
      %c0_9 = arith.constant 0 : index
      %c0_10 = arith.constant 0 : index
      %12 = vector.load %arg6[%c0_9, %c0_10] : memref<8x128xf32, #tpu.memory_space<vmem>>, vector<8x128xf32>
      %c0_11 = arith.constant 0 : index
      %c0_12 = arith.constant 0 : index
      %13 = vector.load %arg4[%c0_11, %c0_12] : memref<1x128xf32, #tpu.memory_space<vmem>>, vector<1x128xf32>
      %14 = vector.broadcast %13 : vector<1x128xf32> to vector<8x128xf32>
      %15 = arith.addf %12, %14 : vector<8x128xf32>
      %c0_13 = arith.constant 0 : index
      %c0_14 = arith.constant 0 : index
      %16 = vector.load %arg5[%c0_13, %c0_14] : memref<8x128xf32, #tpu.memory_space<vmem>>, vector<8x128xf32>
      tpu.vector_store %arg5[%c0_13, %c0_14], %15 {strides = array<i32>} : memref<8x128xf32, #tpu.memory_space<vmem>>, vector<8x128xf32>,
    } else {
    }
    return
  }
  func.func @transform_0(%arg0: i32, %arg1: i32) -> (i32, i32) {
    %c0_i32 = arith.constant 0 : i32
    %c0_i32_0 = arith.constant 0 : i32
    return %c0_i32, %arg1 : i32, i32
  }
  func.func @transform_1(%arg0: i32, %arg1: i32) -> (i32, i32) {
    %c0_i32 = arith.constant 0 : i32
    return %arg1, %arg0 : i32, i32
  }
  func.func @transform_2(%arg0: i32, %arg1: i32) -> (i32, i32) {
    %c0_i32 = arith.constant 0 : i32
    %c0_i32_0 = arith.constant 0 : i32
    return %c0_i32, %arg0 : i32, i32
  }
  func.func @transform_3(%arg0: i32, %arg1: i32) -> (i32, i32) {
    %c0_i32 = arith.constant 0 : i32
    %c0_i32_0 = arith.constant 0 : i32
    return %c0_i32, %arg0 : i32, i32
  }
}

</mosaic_0001>

<bundles_post_ra>
// kernel: tpu_custom_call.1
= control target key start
LH: loop header
LB: loop body
LE: loop exit
PB: predicated region body
PF: predicated region fallthrough
CT: control target
= control target key end

     0   :  { %s1334_s0 = inlined_call_operand.hbm [shape: f32[8,256], index: 0, kind: input, shape index: {}]   ;;  %s1335_s1 = inlined_call_operand.hbm [shape: f32[256,256], index: 1, kind: input, shape index: {}]   ;;  %s1336_s2 = inlined_call_operand.vmem [shape: f32[1,256], index: 2, kind: input, shape index: {}]   ;;  %s1337_s3 = inlined_call_operand.hbm [shape: f32[8,256], index: 3, kind: output, shape index: {}]  }
   0x1   :  { %1345 = sst [smem:[#allocation19_spill]] %s1334_s0 }
   0x2   :  { %8 = vsyncpa [#allocation4], 0 }
   0x3   :  { %10 = vsyncpa [#allocation4 + $0x1], 0 }
   0x4   :  { %11 = vsyncpa [#allocation7], 0 }
   0x5   :  { %13 = vsyncpa [#allocation7 + $0x1], 0 }
   0x6   :  { %14 = vsyncpa [#allocation5], 0 }
   0x7   :  { %16 = vsyncpa [#allocation5 + $0x1], 0  ;;  %s973_s12 = smov 0   ;;  %s975_s13 = smov 0  }
   0x8   :  { %s977_s14 = smov 0   ;;  %s979_s15 = smov 0  }
   0x9   :  { %s981_s16 = smov 0   ;;  %s983_s17 = smov 0  }
   0xa   :  { %s985_s18 = smov 0   ;;  %s987_s19 = smov 0  }
   0xb   :  { %s989_s20 = smov 0   ;;  %s991_s21 = smov 0  }
   0xc   :  { %s993_s22 = smov 0   ;;  %s995_s23 = smov 0  }
   0xd   :  { %s997_s24 = smov 0   ;;  %s999_s25 = smov 0  }
   0xe LB: > { %1346 = sst [smem:[#allocation12_spill]] %s921_s20  ;;  %s495_s26 = sadd.s32 4294967295, %s941_s25   ;;  %s941_s25 = sphi %s999_s25, %s22_s25   ;;  %s937_s24 = sphi %s997_s24, %s1378_s24   ;;  %s933_s23 = sphi %s995_s23, %s1390_s23   ;;  %s929_s22 = sphi %s993_s22, %s1376_s22   ;;  %s925_s21 = sphi %s991_s21, %s1389_s21   ;;  %s921_s20 = sphi %s989_s20, %s1388_s20   ;;  %s917_s19 = sphi %s987_s19, %s1387_s19   ;;  %s913_s18 = sphi %s985_s18, %s1386_s18   ;;  %s909_s17 = sphi %s983_s17, %s1385_s17   ;;  %s905_s16 = sphi %s981_s16, %s1384_s16   ;;  %s901_s15 = sphi %s979_s15, %s1383_s15   ;;  %s897_s14 = sphi %s977_s14, %s1382_s14   ;;  %s893_s13 = sphi %s975_s13, %s1381_s13   ;;  %s889_s12 = sphi %s973_s12, %s1380_s12  }
   0xf   : > { %1347 = sst [smem:[#allocation13_spill]] %s937_s24  ;;  %s31_s28 = sadd.s32 1, %s933_s23 }
  0x10   : > { %s34_s29 = sadd.s32 1, %s937_s24  ;;  %p32_p0 = scmp.ge.s32.totalorder %s31_s28, 2 }
  0x11   : > { %s41_s30 = sadd.s32 1, %s921_s20  ;;  %p48_p1 = scmp.ne.s32.totalorder %s921_s20, %s917_s19 }
  0x12   : > { %p49_p2 = scmp.eq.s32.totalorder %s941_s25, 0  ;;  %s1392_s28 = smov (%p32_p0, %s31_s28), 0 }
  0x13   : > { %1348 = sst [smem:[#allocation14_spill]] %s1392_s28  ;;  %s1394_s29 = smov (!%p32_p0, %s34_s29), %s937_s24 }
  0x14   : > { %s38_s4 = ssub.s32 %s933_s23, %s1392_s28  ;;  %p1056_p3 = por %p49_p2, %p48_p1 }
  0x15   : > { %p36_p4 = scmp.ge.s32.totalorder %s1394_s29, 2  ;;  %p39_p5 = scmp.eq.s32.totalorder %s38_s4, 0 }
  0x16   : > { %p54_p6 = scmp.ne.s32.totalorder %s917_s19, %s913_s18  ;;  %p1063_p7 = scmp.eq.s32.totalorder %s495_s26, 0 }
  0x17   : > { %s1396_s29 = smov (%p36_p4, %s1394_s29), 0  ;;  %s69_s11 = sadd.s32 1, %s909_s17 }
  0x18   : > { %1351 = sst [smem:[#allocation15_spill]] %s1396_s29  ;;  %p1074_p8 = por %p1063_p7, %p54_p6 }
  0x19   : > { %s1070_s7 = scalar_select %p39_p5, %s921_s20, %s41_s30  }
  0x1a   : > { %s1353_s8 = scalar_select %p1074_p8, 1, 0 }
  0x1b   : > { %1352 = sst [smem:[#allocation16_spill]] %s1070_s7  ;;  %s65_s9 = ssub.s32 %s937_s24, %s1396_s29 }
  0x1c   : > { %s66_s10 = sor.u32 %s65_s9, %s38_s4  ;;  %p76_p10 = scmp.ne.s32.totalorder %s909_s17, %s905_s16 }
  0x1d   : > { %p67_p9 = scmp.eq.s32.totalorder %s66_s10, 0  ;;  %p82_p11 = scmp.ne.s32.totalorder %s905_s16, %s901_s15 }
  0x1e   : > { %p119_p12 = scmp.eq.s32.totalorder %s65_s9, 0  ;;  %p1090_p13 = por %p76_p10, %p49_p2 }
  0x1f   : > { %s1086_s18 = scalar_select %p67_p9, %s909_s17, %s69_s11  }
  0x20   : > { %p1096_p0 = por %p82_p11, %p1063_p7  ;;  %s121_s4 = sadd.s32 1, %s897_s14 }
  0x21   : > { %1354 = sst [smem:[#allocation17_spill]] %s1086_s18  ;;  %p131_p1 = scmp.ne.s32.totalorder %s897_s14, %s893_s13 }
  0x22   : > { %s1356_s27 = scalar_select %p1096_p0, 1, 0 }
  0x23   : > { %s1104_s10 = scalar_select %p119_p12, %s897_s14, %s121_s4  }
  0x24   : > { %p132_p4 = scmp.eq.s32.totalorder %s495_s26, 3  ;;  %p137_p5 = scmp.ne.s32.totalorder %s893_s13, %s889_s12 }
  0x25   : > { %1357 = sst [smem:[#allocation18_spill]] %s1104_s10  ;;  %s1358_s15 = sadd.s32 4294967294, %s941_s25  }
  0x26   : > { %p138_p2 = scmp.eq.s32.totalorder %s1358_s15, 3  ;;  %p1112_p6 = por %p132_p4, %p131_p1 }
  0x27   : > { %p610_p7 = scmp.lt.s32.totalorder %s941_s25, 4  ;;  %s158_s11 = sand.u32 1, %s921_s20  }
  0x28   : > { %s1359_s9 = scalar_select %p1112_p6, 1, 0 }
  0x29   : > { %p1117_p9 = por %p138_p2, %p137_p5  ;;  %s499_s29 = sshll.u32 %s158_s11, 3 }
  0x2a   : > { %s500_s4 = sshll.u32 %s933_s23, 7  ;;  %s1361_s0 = sld [smem:[#allocation19_spill]] }
  0x2b   : > { %s1360_s6 = scalar_select %p1117_p9, 1, 0 }
  0x2c   : > { %s162_s15 = scalar_lea.vmem [#allocation3], %s499_s29  ;;  %p1132_p10 = pnand %p610_p7, %p1056_p3 }
  0x2d   : > { %s169_s18 = sshll.u32 %s162_s15, 4  ;;  %p1139_p11 = pnand %p610_p7, %p1090_p13  ;;  %s1128_s18 = int_to_ptr.vmem [resolvable:$true] %s169_s18 }
  0x2e   : > { %s159_s7 = scalar_lea.sflag [#allocation4], %s158_s11  ;;  %p733_p4 = pneg %p1132_p10 }
  0x30   : > { %s1126_s26 = scalar_lea.hbm %s1361_s0, %s500_s4  ;;  %s736_s15 = scalar_lea.hbm %s1361_s0, 256 }
  0x31   : > { %s731_s29 = scalar_lea.hbm %s1126_s26, 128  ;;  %p737_p13 = scmp.lt.u32.totalorder %s1126_s26, %s1361_s0 }
  0x32   : > { %p732_p1 = scmp.ne.s32.totalorder %s1126_s26, %s731_s29  ;;  %p738_p2 = scmp.lt.u32.totalorder %s736_s15, %s731_s29 }
  0x33   : > { %p740_p12 = scmp.lt.u32.totalorder %s731_s29, %s1126_s26 }
  0x34   : > { %p734_p3 = pnand %p733_p4, %p732_p1  ;;  %p739_p7 = por %p738_p2, %p737_p13 }
  0x36   : > { %p735_p5 = pneg %p734_p3  ;;  %p741_p9 = por %p740_p12, %p739_p7 }
  0x38   : > { %p742_p6 = pnand %p741_p9, %p735_p5 }
  0x3a   : > { %745 = shalt.err (!%p742_p6)
}
  0x3b   : > { %s746_s11 = scalar_lea.vmem %s1128_s18, 128  ;;  %s943_s5 = smov [#allocation3]  }
  0x3c   : > { %p747_p1 = scmp.ne.s32.totalorder %s1128_s18, %s746_s11  ;;  %s751_s4 = sshll.u32 %s943_s5, 4  ;;  %s752_s4 = int_to_ptr.vmem [resolvable:$false] %s751_s4 }
  0x3d   : > { %s753_s20 = scalar_lea.vmem %s752_s4, 256  ;;  %p754_p8 = scmp.lt.s32.totalorder %s1128_s18, %s752_s4 }
  0x3e   : > { %p749_p3 = pnand %p747_p1, %p733_p4  ;;  %p755_p13 = scmp.lt.s32.totalorder %s753_s20, %s746_s11 }
  0x40   : > { %p750_p0 = pneg %p749_p3  ;;  %p756_p2 = por %p755_p13, %p754_p8 }
  0x42   : > { %p757_p12 = pnand %p756_p2, %p750_p0 }
  0x44   : > { %760 = shalt.err (!%p757_p12)
}
  0x45   : > { %602 = dma.hbm_to_vmem [thread:$0]  (!%p1132_p10), %s1126_s26, 128, %s1128_s18, %s159_s7  }
  0x46   : > { %p203_p6 = scmp.lt.s32.totalorder %s941_s25, 5  ;;  %s176_s29 = sand.u32 1, %s909_s17  }
  0x47   : > { %s1364_s15 = sshll.u32 %s933_s23, 5  ;;  %p1365_p9 = scmp.ge.s32.totalorder %s941_s25, 1 }
  0x48   : > { %s186_s30 = sadd.s32 %s937_s24, %s1364_s15  ;;  %s501_s10 = sshll.u32 %s176_s29, 7 }
  0x49   : > { %p1176_p8 = pnand %p1365_p9, %p203_p6  ;;  %s504_s5 = sshll.u32 %s186_s30, 7 }
  0x4a   : > { %s1183_s0 = scalar_lea.hbm %s1335_s1, %s504_s5  ;;  %s180_s18 = scalar_lea.vmem [#allocation6], %s501_s10 }
  0x4b   : > { %s189_s26 = sshll.u32 %s180_s18, 4  ;;  %s1187_s7 = scalar_lea.sflag [#allocation7], %s176_s29  ;;  %s1185_s26 = int_to_ptr.vmem [resolvable:$true] %s189_s26 }
  0x4c   : > { %s761_s15 = scalar_lea.hbm %s1183_s0, 2048  ;;  %p763_p10 = pneg %p1139_p11 }
  0x4d   : > { %p762_p0 = scmp.ne.s32.totalorder %s1183_s0, %s761_s15  ;;  %s766_s4 = scalar_lea.hbm %s1335_s1, 8192 }
  0x4e   : > { %p767_p7 = scmp.lt.u32.totalorder %s1183_s0, %s1335_s1  ;;  %p768_p1 = scmp.lt.u32.totalorder %s766_s4, %s761_s15 }
  0x4f   : > { %p764_p4 = pnand %p763_p10, %p762_p0  ;;  %p770_p13 = scmp.lt.u32.totalorder %s761_s15, %s1183_s0 }
  0x50   : > { %p769_p3 = por %p768_p1, %p767_p7 }
  0x51   : > { %p765_p5 = pneg %p764_p4 }
  0x52   : > { %p771_p2 = por %p770_p13, %p769_p3 }
  0x54   : > { %p772_p12 = pnand %p771_p2, %p765_p5 }
  0x56   : > { %775 = shalt.err (!%p772_p12)
}
  0x57   : > { %s776_s29 = scalar_lea.vmem %s1185_s26, 2048  ;;  %s944_s10 = smov [#allocation6]  }
  0x58   : > { %p777_p6 = scmp.ne.s32.totalorder %s1185_s26, %s776_s29  ;;  %s781_s18 = sshll.u32 %s944_s10, 4  ;;  %s782_s18 = int_to_ptr.vmem [resolvable:$false] %s781_s18 }
  0x59   : > { %s783_s24 = scalar_lea.vmem %s782_s18, 4096  ;;  %p784_p4 = scmp.lt.s32.totalorder %s1185_s26, %s782_s18 }
  0x5a   : > { %p779_p9 = pnand %p777_p6, %p763_p10  ;;  %p785_p7 = scmp.lt.s32.totalorder %s783_s24, %s776_s29 }
  0x5c   : > { %p780_p0 = pneg %p779_p9  ;;  %p786_p1 = por %p785_p7, %p784_p4 }
  0x5e   : > { %p787_p3 = pnand %p786_p1, %p780_p0 }
  0x60   : > { %790 = shalt.err (!%p787_p3)
}
  0x61   : > { %s945_s15 = smov 256   ;;  %s946_s30 = smov 128  }
  0x62   : > { %s947_s5 = smov 8   ;;  %207 = sbr.rel (%p1176_p8) target bundleno = 403 (0x193), region = 32 }
  0x63   : > { %605 = dma.hbm_to_vmem [thread:$0]  (!%p1139_p11), %s1183_s0, 2048, %s1185_s26, %s1187_s7, %s945_s15, %s946_s30, %s947_s5  }
  0x64   : > { %s209_s4 = sand.u32 (!%p1176_p8), 1, %s917_s19   ;;  %p1367_p10 = scmp.ne.s32.totalorder (!%p1176_p8), %s1353_s8, 0 }
  0x65   : > { %s1218_s20 = sshll.u32 (!%p1176_p8), %s209_s4, 3  ;;  %s210_s29 = scalar_lea.sflag (!%p1176_p8), [#allocation4], %s209_s4 }
  0x66   : > { %s213_s10 = scalar_lea.vmem (!%p1176_p8), [#allocation3], %s1218_s20 }
  0x69   : > { %876 = dma.done.wait (%p1367_p10), %s210_s29, 128  }
  0x6a   : > { %878 = vsyncadd (%p1367_p10), %s210_s29, 4294967168  ;;  %s218_s28 = sand.u32 1, %s905_s16   ;;  %p1368_p11 = scmp.ne.s32.totalorder %s1356_s27, 0 }
  0x6b   : > { %s507_s0 = sshll.u32 %s218_s28, 7  ;;  %s219_s26 = scalar_lea.sflag [#allocation7], %s218_s28 }
  0x6c   : > { %s222_s11 = scalar_lea.vmem [#allocation6], %s507_s0 }
  0x6d   : > { %880 = dma.done.wait (%p1368_p11), %s219_s26, 2048  }
  0x6e   : > { %882 = vsyncadd (%p1368_p11), %s219_s26, 4294965248  ;;  %s250_s7 = sand.u32 1, %s893_s13   ;;  %p254_p8 = scmp.lt.s32.totalorder %s929_s22, 1  ;;  %v257_v0 = vld [vmem:[%s222_s11] sm:$0xff]  ;;  %v258_v1 = vld [vmem:[%s222_s11 + $0x8] sm:$0xff] }
  0x6f   : > { %s1234_s8 = sshll.u32 %s250_s7, 3  ;;  %v259_v2 = vld [vmem:[%s222_s11 + $0x10] sm:$0xff]  ;;  %v260_v3 = vld [vmem:[%s222_s11 + $0x18] sm:$0xff]  ;;  %v261_v4 = vld [vmem:[%s222_s11 + $0x20] sm:$0xff]  ;;  %p509_p5 = scmp.ne.s32.totalorder %s925_s21, 0 }
  0x70   : > { %s1237_s18 = scalar_select %p254_p8, %s929_s22, 1  ;;  %v262_v5 = vld [vmem:[%s222_s11 + $0x28] sm:$0xff]  ;;  %v263_v6 = vld [vmem:[%s222_s11 + $0x30] sm:$0xff]  ;;  %v264_v7 = vld [vmem:[%s222_s11 + $0x38] sm:$0xff] }
  0x71   : > { %v265_v8 = vld [vmem:[%s222_s11 + $0x40] sm:$0xff]  ;;  %v266_v9 = vld [vmem:[%s222_s11 + $0x48] sm:$0xff]  ;;  %v267_v10 = vld [vmem:[%s222_s11 + $0x50] sm:$0xff]  ;;  %s252_s27 = scalar_lea.vmem [#allocation8], %s1234_s8  ;;  %276 = sbr.rel (%p509_p5) target bundleno = 120 (0x78), region = 44  ;;  %v948_v16 = vmov (!%p509_p5), 0.0  }
  0x72   : > { %s256_s30 = scalar_lea.vmem %s1336_s2, %s1237_s18  ;;  %v268_v11 = vld [vmem:[%s222_s11 + $0x58] sm:$0xff]  ;;  %v269_v12 = vld [vmem:[%s222_s11 + $0x60] sm:$0xff]  ;;  %v270_v13 = vld [vmem:[%s222_s11 + $0x68] sm:$0xff]  ;;  %277 = vst [vmem:[#allocation2] sm:$0xff] (!%p509_p5), %v948_v16 }
  0x73   : > { %v271_v14 = vld [vmem:[%s222_s11 + $0x70] sm:$0xff]  ;;  %v272_v15 = vld [vmem:[%s222_s11 + $0x78] sm:$0xff] }
  0x78 PF: > { %v570_v17 = vpack.c.bf16 %v258_v1, %v257_v0  ;;  %v949_v18 = vmov 0.0|0.0   ;;  %v573_v19 = vpack.c.bf16 %v260_v3, %v259_v2  ;;  %vm950_vm0 = vmmov 0   ;;  %v279_v27 = vld [vmem:[%s213_s10] sm:$0xff]  ;;  %p510_p13 = scmp.ne.s32.totalorder %s925_s21, 1 }
  0x79   : > { %569 = vmatprep.subr.bf16.mxu0 %v949_v18  ;;  %v951_v20 = vmov 0.0   ;;  %v576_v21 = vpack.c.bf16 %v262_v5, %v261_v4  ;;  %v579_v22 = vpack.c.bf16 %v264_v7, %v263_v6  ;;  %v582_v23 = vpack.c.bf16 %v266_v9, %v265_v8  ;;  %v278_v28 = vld [vmem:[#allocation2] sm:$0xff] }
  0x7a   : > { %571 = vmatpush3.bf16.msra.mxu0 %v570_v17  ;;  %566 = vmatprep.mubr.msk.f32.mxu0 %vm950_vm0, %v951_v20  ;;  %v585_v24 = vpack.c.bf16 %v268_v11, %v267_v10  ;;  %v588_v25 = vpack.c.bf16 %v270_v13, %v269_v12  ;;  %v591_v26 = vpack.c.bf16 %v272_v15, %v271_v14  ;;  %v511_v33 = vld [vmem:[%s256_s30] ss:$0 sm:$0xff] (!%p510_p13) }
  0x7b   : > { %572 = vmatprep.subr.bf16.mxu0 %v949_v18 }
  0x7e   : > { %574 = vmatpush3.bf16.msra.mxu0 %v573_v19 }
  0x7f   : > { %575 = vmatprep.subr.bf16.mxu0 %v949_v18 }
  0x82   : > { %577 = vmatpush3.bf16.msra.mxu0 %v576_v21 }
  0x83   : > { %578 = vmatprep.subr.bf16.mxu0 %v949_v18 }
  0x86   : > { %580 = vmatpush3.bf16.msra.mxu0 %v579_v22 }
  0x87   : > { %581 = vmatprep.subr.bf16.mxu0 %v949_v18 }
  0x8a   : > { %583 = vmatpush3.bf16.msra.mxu0 %v582_v23 }
  0x8b   : > { %584 = vmatprep.subr.bf16.mxu0 %v949_v18 }
  0x8e   : > { %586 = vmatpush3.bf16.msra.mxu0 %v585_v24 }
  0x8f   : > { %587 = vmatprep.subr.bf16.mxu0 %v949_v18 }
  0x92   : > { %589 = vmatpush3.bf16.msra.mxu0 %v588_v25 }
  0x93   : > { %590 = vmatprep.subr.bf16.mxu0 %v949_v18 }
  0x96   : > { %592 = vmatpush3.bf16.msra.mxu0 %v591_v26 }
  0x99   : > { %567 = vmatmul.mubr.f32.vlgmr.msra.gmra.mrb[0].mxu0 %v279_v27 }
 0x169   : > { %355 = sbr.rel (%p510_p13) target bundleno = 378 (0x17a), region = 48 }
 0x16c   : > { %v346_v29 = vpop.f32.mrb[0].mxu0 }
 0x16d   : > { %v350_v30 = vadd.f32 %v346_v29, %v278_v28  ;;  %v568_v31 = vpop.f32.mrb[1].mxu0 }
 0x16f   : > { %351 = vst [vmem:[#allocation2] sm:$0xff] %v350_v30 }
 0x176   : > { %v356_v32 = vld [vmem:[#allocation2] sm:$0xff] }
 0x177   : > { %v364_v34 = vadd.f32 %v511_v33, %v356_v32 }
 0x179   : > { %365 = vst [vmem:[%s252_s27] sm:$0xff] %v364_v34 }
 0x17a PF: > { %s513_s20 = sshll.u32 %s929_s22, 7  ;;  %s380_s28 = sshll.u32 %s252_s27, 4  ;;  %s381_s28 = int_to_ptr.vmem [resolvable:$true] %s380_s28 }
 0x17b   : > { %s1259_s10 = scalar_lea.hbm %s1337_s3, %s513_s20  ;;  %s367_s0 = scalar_lea.sflag [#allocation5], %s250_s7 }
 0x17c   : > { %s791_s26 = scalar_lea.vmem %s381_s28, 128  ;;  %p1369_p12 = scmp.ne.s32.totalorder %s1359_s9, 0 }
 0x17d   : > { %p792_p2 = scmp.ne.s32.totalorder %s381_s28, %s791_s26  ;;  %s952_s11 = smov [#allocation8]  }
 0x17e   : > { %s795_s18 = sshll.u32 %s952_s11, 4  ;;  %s796_s18 = int_to_ptr.vmem [resolvable:$false] %s795_s18 }
 0x17f   : > { %p793_p6 = pnand %p792_p2, %p1369_p12  ;;  %s797_s24 = scalar_lea.vmem %s796_s18, 256 }
 0x180   : > { %p798_p0 = scmp.lt.s32.totalorder %s381_s28, %s796_s18  ;;  %p799_p4 = scmp.lt.s32.totalorder %s797_s24, %s791_s26 }
 0x181   : > { %p794_p9 = pneg %p793_p6 }
 0x182   : > { %p800_p7 = por %p799_p4, %p798_p0 }
 0x184   : > { %p801_p1 = pnand %p800_p7, %p794_p9 }
 0x186   : > { %804 = shalt.err (!%p801_p1)
}
 0x187   : > { %s805_s22 = scalar_lea.hbm %s1259_s10, 128  ;;  %s809_s15 = scalar_lea.hbm %s1337_s3, 256 }
 0x188   : > { %p806_p3 = scmp.ne.s32.totalorder %s1259_s10, %s805_s22  ;;  %p810_p8 = scmp.lt.u32.totalorder %s1259_s10, %s1337_s3 }
 0x189   : > { %p811_p5 = scmp.lt.u32.totalorder %s809_s15, %s805_s22  ;;  %p813_p2 = scmp.lt.u32.totalorder %s805_s22, %s1259_s10 }
 0x18a   : > { %p807_p10 = pnand %p806_p3, %p1369_p12 }
 0x18b   : > { %p812_p13 = por %p811_p5, %p810_p8 }
 0x18c   : > { %p808_p11 = pneg %p807_p10 }
 0x18d   : > { %p814_p6 = por %p813_p2, %p812_p13 }
 0x18f   : > { %p815_p9 = pnand %p814_p6, %p808_p11 }
 0x191   : > { %818 = shalt.err (!%p815_p9)
}
 0x192   : > { %597 = dma.vmem_to_hbm [thread:$0]  (%p1369_p12), %s381_s28, 128, %s1259_s10, %s367_s0  }
 0x193 PF: > { %p611_p0 = scmp.ge.s32.totalorder %s941_s25, 2  ;;  %s392_s5 = sand.u32 1, %s889_s12  }
 0x194   : > { %p1370_p4 = scmp.ne.s32.totalorder %s1360_s6, 0  ;;  %s393_s4 = scalar_lea.sflag [#allocation5], %s392_s5 }
 0x196   : > { %p607_p7 = pnand %p611_p0, %p1370_p4 }
 0x198   : > { %884 = dma.done.wait (!%p607_p7), %s393_s4, 128  }
 0x199   : > { %886 = vsyncadd (!%p607_p7), %s393_s4, 4294967168  ;;  %s22_s25 = sadd.s32 1, %s941_s25   ;;  %s1372_s9 = sld [smem:[#allocation18_spill]] }
 0x19a   : > { %p1287_p1 = scmp.ge.s32.totalorder %s22_s25, 6   ;;  %s1373_s29 = sld [smem:[#allocation17_spill]] }
 0x19b   : > { %s1374_s21 = sld [smem:[#allocation12_spill]]  ;;  %s1375_s10 = sld [smem:[#allocation16_spill]] }
 0x19c   : > { %s1376_s22 = sld [smem:[#allocation13_spill]]  ;;  %s1377_s6 = sld [smem:[#allocation14_spill]] }
 0x19d   : > { %s1378_s24 = sld [smem:[#allocation15_spill]]  ;;  %s1380_s12 = smov %s893_s13 }
 0x19e   : > { %s1381_s13 = smov %s897_s14  ;;  %s1383_s15 = smov %s905_s16 }
 0x19f   : > { %s1382_s14 = smov %s1372_s9  ;;  %s1384_s16 = smov %s909_s17 }
 0x1a0   : > { %s1385_s17 = smov %s1373_s29  ;;  %s1386_s18 = smov %s917_s19 }
 0x1a1   : > { %s1387_s19 = smov %s1374_s21  ;;  %s1388_s20 = smov %s1375_s10 }
 0x1a2   : > { %s1389_s21 = smov %s933_s23  ;;  %s1390_s23 = smov %s1377_s6 }
 0x1a3   :  { %21 = sbr.rel (!%p1287_p1) target bundleno = 14 (0xe), region = 101 }
 0x1aa   :  { %398 = vsyncpa [#allocation4], 1 }
 0x1ab   :  { %400 = vsyncpa [#allocation4 + $0x1], 1 }
 0x1ac   :  { %401 = vsyncpa [#allocation7], 1 }
 0x1ad   :  { %403 = vsyncpa [#allocation7 + $0x1], 1 }
 0x1ae   :  { %404 = vsyncpa [#allocation5], 1 }
 0x1af   :  { %406 = vsyncpa [#allocation5 + $0x1], 1 }

</bundles_post_ra>
